<compile_context>
chip_gen: v7x
topology: tpu7x:2x2x1
jax: 0.10.0
libtpu: 0.0.40
codegen_flags: <defaults>
</compile_context>

<pallas_src>
import functools
import math

import jax
import jax.numpy as jnp
from jax import lax
from jax.experimental import pallas as pl
from jax.experimental.pallas import tpu as pltpu

# ---- module hyperparameters (from bigram.py) --------------------------------
block_size = 8          # max sequence length
n_embed = 32            # embedding dim
vocab_size = 65         # |set(text)| (e.g. tiny-Shakespeare)

LANE = 128              # TPU lane width; pad the vocab axis to a multiple


# ---- Pallas kernel -----------------------------------------------------------
def bigram_fwd_kernel(idx_ref, tok_logits_ref, pos_logits_ref, out_ref):
    """out = onehot(idx) @ tok_logits  (+ broadcast)  pos_logits.

    Per-grid-step shapes (everything resident in VMEM):
      idx_ref        : (bt_blk, 1)     int32   flattened token ids
      tok_logits_ref : (V_pad, V_pad)  float32 (tok_table @ W^T + b, padded)
      pos_logits_ref : (T, V_pad)      float32 (pos_table[:T] @ W^T, padded)
      out_ref        : (bt_blk, V_pad) float32
    Requires bt_blk % T == 0 (positions repeat every T rows of the flattened
    (B*T) axis).  With T == 8 == f32 sublane count the reshape is layout-free.
    """
    bt, _ = idx_ref.shape
    v_pad = tok_logits_ref.shape[0]
    seq_t = pos_logits_ref.shape[0]
    reps = bt // seq_t                                        # static

    idx = idx_ref[...]                                        # (bt, 1) int32

    # Token-logit gather as a lane-aligned one-hot matmul on the MXU (exact:
    # one product per output element).
    lane_iota = lax.broadcasted_iota(jnp.int32, (bt, v_pad), 1)
    onehot = (lane_iota == idx).astype(jnp.float32)           # (bt, V_pad)
    tok_logits = jnp.dot(onehot, tok_logits_ref[...],
                         preferred_element_type=jnp.float32)  # (bt, V_pad)

    # Positional contribution: broadcast add of the constant (T, V_pad) table
    # (no jnp.tile materialization of a (bt, V_pad) temp).
    out_ref[...] = (tok_logits.reshape(reps, seq_t, v_pad)
                    + pos_logits_ref[...]).reshape(bt, v_pad)


# ---- one-time precompute (NOT in the per-call path) --------------------------
def fold_lm_head(tok_table, pos_table, lm_w, lm_b, seq_len,
                 pad_columns_with=0.0):
    """Fold lm_head into the embedding tables and pad the vocab axis to 128.

        logits = (tok_emb + pos_emb) @ W^T + b
               = tok_emb @ W^T + b   +   pos_emb @ W^T

    Call once when weights are set.  Keep pad_columns_with=0.0 if the padded
    columns are sliced off afterwards; use a large negative value (e.g. -1e30)
    if a softmax / cross-entropy consumes the padded (.., 128) logits directly.
    """
    V, _ = tok_table.shape
    V_pad = ((V + LANE - 1) // LANE) * LANE                   # 65 -> 128
    tok_logits = tok_table @ lm_w.T + lm_b                    # (V, V)
    pos_logits = pos_table[:seq_len] @ lm_w.T                 # (T, V)
    tok_p = jnp.full((V_pad, V_pad), pad_columns_with, jnp.float32)
    tok_p = tok_p.at[:V, :V].set(tok_logits.astype(jnp.float32))
    pos_p = jnp.zeros((seq_len, V_pad), jnp.float32)
    pos_p = pos_p.at[:, :V].set(pos_logits.astype(jnp.float32))
    return tok_p, pos_p


def _pick_bt_block(bt_total, seq_len, *, max_block=2048, split_threshold=1024):
    """Rows per grid step: a multiple of T (positional pattern) and of 8 (f32
    sublanes) that divides B*T, capped at `max_block` (VMEM guard, matters
    first on v7x), and giving >= 2 grid steps once B*T >= `split_threshold`
    so both v7x TensorCores get work via the "parallel" grid axis."""
    step = (seq_len * 8) // math.gcd(seq_len, 8)
    cap = min(bt_total, max_block)
    if bt_total >= split_threshold:
        cap = min(cap, max(step, ((bt_total // 2) // step) * step))
    cand = (cap // step) * step
    while cand >= step:
        if bt_total % cand == 0:
            return cand
        cand -= step
    # Awkward B*T (not a multiple of lcm(T, 8)): fall back to one block.
    # TODO(synk): for very large awkward B*T, pad the row axis instead so this
    # fallback cannot exceed the scoped VMEM limit.
    return bt_total


# ---- wrapper -----------------------------------------------------------------
def bigram_forward(idx, tok_logits_p, pos_logits_p, *, vocab,
                   return_padded=False):
    """idx: (B, T) int -> (logits (B, T, vocab) float32, loss=None).

    tok_logits_p / pos_logits_p are the folded + padded tables from
    fold_lm_head (precomputed once per weight update, not per forward call).
    """
    B, T = idx.shape
    BT = B * T
    V_pad = tok_logits_p.shape[-1]
    assert pos_logits_p.shape == (T, V_pad)

    idx_flat = idx.reshape(BT, 1).astype(jnp.int32)

    bt_block = _pick_bt_block(BT, T)
    n_steps = BT // bt_block if BT % bt_block == 0 else 1
    if BT % bt_block != 0:      # only possible on the awkward fallback path
        bt_block, n_steps = BT, 1
    grid = (n_steps,)
    multi_step = n_steps > 1

    # Single-buffer the tiny idx tile and the constant tables when the grid
    # has multiple steps (the tables are only fetched once anyway and the idx
    # DMA is tiny); saves the lane-padded idx + table double buffers in VMEM.
    if multi_step:
        idx_spec = pl.BlockSpec((bt_block, 1), lambda i: (i, 0),
                                pipeline_mode=pl.Buffered(1))
        tok_spec = pl.BlockSpec((V_pad, V_pad), lambda i: (0, 0),
                                pipeline_mode=pl.Buffered(1))
        pos_spec = pl.BlockSpec((T, V_pad), lambda i: (0, 0),
                                pipeline_mode=pl.Buffered(1))
    else:
        idx_spec = pl.BlockSpec((bt_block, 1), lambda i: (i, 0))
        tok_spec = pl.BlockSpec((V_pad, V_pad), lambda i: (0, 0))
        pos_spec = pl.BlockSpec((T, V_pad), lambda i: (0, 0))

    logits_pad = pl.pallas_call(
        bigram_fwd_kernel,
        out_shape=jax.ShapeDtypeStruct((BT, V_pad), jnp.float32),
        grid=grid,
        in_specs=[idx_spec, tok_spec, pos_spec],
        out_specs=pl.BlockSpec((bt_block, V_pad), lambda i: (i, 0)),
        compiler_params=pltpu.CompilerParams(
            dimension_semantics=("parallel",)),
    )(idx_flat, tok_logits_p, pos_logits_p)

    loss = None  # targets=None path of the reference forward
    if return_padded:
        # Skip the extra 128 -> vocab slice pass; the consumer handles the
        # padded columns (fold with pad_columns_with=-1e30 before a softmax).
        return logits_pad.reshape(B, T, V_pad), loss
    return logits_pad[:, :vocab].reshape(B, T, vocab), loss


# ---- reference (pure JAX) for sanity check -----------------------------------
def bigram_forward_ref(idx, tok_table, pos_table, lm_w, lm_b):
    B, T = idx.shape
    token_emb = tok_table[idx]                      # (B, T, E)
    pos_emb = pos_table[jnp.arange(T)]              # (T, E)
    x = token_emb + pos_emb
    logits = x @ lm_w.T + lm_b                      # (B, T, V)
    return logits


if __name__ == "__main__":
    key = jax.random.PRNGKey(0)
    k_tok, k_pos, k_w, k_b, k_idx = jax.random.split(key, 5)

    # Deterministic parameter init (shapes from the module's __init__):
    #   token_embedding_table    : (vocab_size, n_embed)
    #   position_embedding_table : (block_size, n_embed)
    #   lm_head : Linear(n_embed, vocab_size) -> weight (vocab, n_embed), bias (vocab,)
    tok_table = jax.random.normal(k_tok, (vocab_size, n_embed), jnp.float32)
    pos_table = jax.random.normal(k_pos, (block_size, n_embed), jnp.float32)
    bound = 1.0 / (n_embed ** 0.5)
    lm_w = jax.random.uniform(k_w, (vocab_size, n_embed), jnp.float32,
                              minval=-bound, maxval=bound)
    lm_b = jax.random.uniform(k_b, (vocab_size,), jnp.float32,
                              minval=-bound, maxval=bound)

    # Small example input consistent with the module: idx (B=2, T=block_size=8).
    B, T = 2, block_size
    idx = jax.random.randint(k_idx, (B, T), 0, vocab_size, dtype=jnp.int32)

    # lm_head fold + padding: precomputed ONCE, outside the per-call path.
    tok_logits_p, pos_logits_p = fold_lm_head(tok_table, pos_table, lm_w, lm_b, T)
    tok_logits_p, pos_logits_p = jax.block_until_ready(
        (tok_logits_p, pos_logits_p))

    fwd = jax.jit(functools.partial(bigram_forward, vocab=vocab_size))
    logits, loss = fwd(idx, tok_logits_p, pos_logits_p)
    logits = jax.block_until_ready(logits)

    ref = bigram_forward_ref(idx, tok_table, pos_table, lm_w, lm_b)
    assert logits.shape == (B, T, vocab_size)
    assert loss is None
    assert jnp.allclose(logits, ref, atol=1e-4, rtol=1e-4), float(
        jnp.max(jnp.abs(logits - ref)))

    print("KERNEL_OK")
</pallas_src>

<mosaic_0001>
module attributes {stable_mosaic.version = 11 : i64} {
  func.func @bigram_fwd_kernel(%arg0: i32, %arg1: memref<16x1xi32, #tpu.memory_space<vmem>>, %arg2: memref<128x128xf32, #tpu.memory_space<vmem>>, %arg3: memref<8x128xf32, #tpu.memory_space<vmem>>, %arg4: memref<16x128xf32, #tpu.memory_space<vmem>>) attributes {dimension_semantics = [#tpu.dimension_semantics<parallel>], iteration_bounds = array<i64: 1>, scalar_prefetch = 0 : i64, scratch_operands = 0 : i64, tpu.core_type = #tpu.core_type<tc>, window_params = [{transform_indices = @transform_0, window_bounds = array<i64: 16, 1>}, {pipeline_mode = #tpu.pipeline_mode<synchronous>, transform_indices = @transform_1, window_bounds = array<i64: 128, 128>}, {pipeline_mode = #tpu.pipeline_mode<synchronous>, transform_indices = @transform_2, window_bounds = array<i64: 8, 128>}, {transform_indices = @transform_3, window_bounds = array<i64: 16, 128>}]} {
    %c0 = arith.constant 0 : index
    %c0_0 = arith.constant 0 : index
    %0 = vector.load %arg1[%c0, %c0_0] : memref<16x1xi32, #tpu.memory_space<vmem>>, vector<16x1xi32>
    %1 = tpu.iota {dimensions = array<i32: 1>} : vector<16x128xi32>
    %2 = vector.broadcast %0 : vector<16x1xi32> to vector<16x128xi32>
    %3 = arith.cmpi eq, %1, %2 : vector<16x128xi32>
    %4 = arith.extui %3 : vector<16x128xi1> to vector<16x128xi32>
    %5 = arith.sitofp %4 : vector<16x128xi32> to vector<16x128xf32>
    %c0_1 = arith.constant 0 : index
    %c0_2 = arith.constant 0 : index
    %6 = vector.load %arg2[%c0_1, %c0_2] : memref<128x128xf32, #tpu.memory_space<vmem>>, vector<128x128xf32>
    %cst = arith.constant dense<0.000000e+00> : vector<16x128xf32>
    %7 = tpu.matmul %5, %6, %cst {dimension_numbers = #tpu.dot_dimension_numbers<[1], [0], [0], [1], [0, 0, 1, 1], [], []>} : vector<16x128xf32>, vector<128x128xf32>, vector<16x128xf32> -> vector<16x128xf32>
    %8 = vector.shape_cast %7 : vector<16x128xf32> to vector<2x8x128xf32>
    %c0_3 = arith.constant 0 : index
    %c0_4 = arith.constant 0 : index
    %9 = vector.load %arg3[%c0_3, %c0_4] : memref<8x128xf32, #tpu.memory_space<vmem>>, vector<8x128xf32>
    %10 = vector.shape_cast %9 : vector<8x128xf32> to vector<1x8x128xf32>
    %11 = vector.broadcast %10 : vector<1x8x128xf32> to vector<2x8x128xf32>
    %12 = arith.addf %8, %11 : vector<2x8x128xf32>
    %13 = vector.shape_cast %12 : vector<2x8x128xf32> to vector<16x128xf32>
    %c0_5 = arith.constant 0 : index
    %c0_6 = arith.constant 0 : index
    %14 = vector.load %arg4[%c0_5, %c0_6] : memref<16x128xf32, #tpu.memory_space<vmem>>, vector<16x128xf32>
    tpu.vector_store %arg4[%c0_5, %c0_6], %13 {strides = array<i32>} : memref<16x128xf32, #tpu.memory_space<vmem>>, vector<16x128xf32>,
    return
  }
  func.func @transform_0(%arg0: i32) -> (i32, i32) {
    %c0_i32 = arith.constant 0 : i32
    %c0_i32_0 = arith.constant 0 : i32
    return %arg0, %c0_i32 : i32, i32
  }
  func.func @transform_1(%arg0: i32) -> (i32, i32) {
    %c0_i32 = arith.constant 0 : i32
    %c0_i32_0 = arith.constant 0 : i32
    %c0_i32_1 = arith.constant 0 : i32
    return %c0_i32, %c0_i32_0 : i32, i32
  }
  func.func @transform_2(%arg0: i32) -> (i32, i32) {
    %c0_i32 = arith.constant 0 : i32
    %c0_i32_0 = arith.constant 0 : i32
    %c0_i32_1 = arith.constant 0 : i32
    return %c0_i32, %c0_i32_0 : i32, i32
  }
  func.func @transform_3(%arg0: i32) -> (i32, i32) {
    %c0_i32 = arith.constant 0 : i32
    %c0_i32_0 = arith.constant 0 : i32
    return %arg0, %c0_i32 : i32, i32
  }
}

</mosaic_0001>

<bundles_post_ra>
// kernel: bigram_forward.1
= control target key start
LH: loop header
LB: loop body
LE: loop exit
PB: predicated region body
PF: predicated region fallthrough
CT: control target
= control target key end

     0   :  { %8 = vsyncpa [#allocation3], 0  ;;  %s264_s12 = smov [#allocation2]   ;;  %s316_s0 = inlined_call_operand.vmem [shape: s32[16,1], index: 0, kind: input, shape index: {}]   ;;  %s317_s1 = inlined_call_operand.hbm [shape: f32[128,128], index: 1, kind: input, shape index: {}]   ;;  %s318_s2 = inlined_call_operand.vmem [shape: f32[8,128], index: 2, kind: input, shape index: {}]   ;;  %s319_s3 = inlined_call_operand.vmem [shape: f32[16,128], index: 3, kind: output, shape index: {}]  }
   0x1   :  { %s16_s13 = sshll.u32 %s264_s12, 4  ;;  %s240_s16 = scalar_lea.hbm %s317_s1, 2048  ;;  %s17_s13 = int_to_ptr.vmem [resolvable:$true] %s16_s13 }
   0x2   :  { %p241_p0 = scmp.ne.s32.totalorder %s317_s1, %s240_s16  ;;  %p244_p1 = scmp.lt.u32.totalorder %s240_s16, %s317_s1 }
   0x4   :  { %p246_p2 = pnand %p244_p1, %p241_p0 }
   0x6   :  { %249 = shalt.err (!%p246_p2)
}
   0x7   :  { %s250_s21 = scalar_lea.vmem %s17_s13, 2048  ;;  %p255_p4 = scmp.lt.s32.totalorder %s17_s13, %s17_s13 }
   0x8   :  { %p251_p3 = scmp.ne.s32.totalorder %s17_s13, %s250_s21  ;;  %p256_p5 = scmp.lt.s32.totalorder %s250_s21, %s250_s21 }
   0xa   :  { %p257_p6 = por %p256_p5, %p255_p4 }
   0xc   :  { %p258_p7 = pnand %p257_p6, %p251_p3 }
   0xe   :  { %261 = shalt.err (!%p258_p7)
}
   0xf   :  { %s265_s22 = smov 128   ;;  %s266_s23 = smov 8  }
  0x10   :  { %22 = dma.hbm_to_vmem [thread:$0]  %s317_s1, 2048, %s17_s13, [#allocation3], %s265_s22, %s265_s22, %s266_s23  }
  0x11   :  { %262 = dma.done.wait [#allocation3], 2048  }
  0x12   :  { %263 = vsyncadd [#allocation3], 4294965248  ;;  %v267_v0 = vmov 0   ;;  %v28_v1 = vld [vmem:[%s316_s0] sm:$0xff]  ;;  %v45_v3 = vld [vmem:[#allocation2 + $0x8] sm:$0xff]  ;;  %v30_v27 = vlaneseq  ;;  %v268_v30 = vmov 1.0  }
  0x13   :  { %239 = vset.pattern.permute.xlu0 %v267_v0  ;;  %v44_v2 = vld [vmem:[#allocation2] sm:$0xff]  ;;  %v46_v4 = vld [vmem:[#allocation2 + $0x10] sm:$0xff]  ;;  %v47_v5 = vld [vmem:[#allocation2 + $0x18] sm:$0xff] }
  0x14   :  { %33 = vperm.xlu0 %239, %v28_v1   ;;  %v29_v6 = vld [vmem:[%s316_s0 + $0x8] sm:$0xff]  ;;  %v202_v7 = vpack.c.bf16 %v45_v3, %v44_v2  ;;  %v206_v8 = vpack.c.bf16 %v47_v5, %v46_v4  ;;  %v48_v9 = vld [vmem:[#allocation2 + $0x20] sm:$0xff]  ;;  %v50_v12 = vld [vmem:[#allocation2 + $0x30] sm:$0xff]  ;;  %v31_v28 = vand.u32 127, %v30_v27 }
  0x15   :  { %v49_v10 = vld [vmem:[#allocation2 + $0x28] sm:$0xff]  ;;  %v51_v13 = vld [vmem:[#allocation2 + $0x38] sm:$0xff]  ;;  %v52_v15 = vld [vmem:[#allocation2 + $0x40] sm:$0xff] }
  0x16   :  { %203 = vmatprep.subr.bf16.mxu0 %v202_v7  ;;  %v210_v11 = vpack.c.bf16 %v49_v10, %v48_v9  ;;  %v214_v14 = vpack.c.bf16 %v51_v13, %v50_v12  ;;  %v53_v16 = vld [vmem:[#allocation2 + $0x48] sm:$0xff]  ;;  %v54_v18 = vld [vmem:[#allocation2 + $0x50] sm:$0xff]  ;;  %v55_v19 = vld [vmem:[#allocation2 + $0x58] sm:$0xff] }
  0x17   :  { %205 = vmatpush3.bf16.msra.mxu0 %v202_v7  ;;  %v218_v17 = vpack.c.bf16 %v53_v16, %v52_v15  ;;  %v222_v20 = vpack.c.bf16 %v55_v19, %v54_v18  ;;  %v56_v21 = vld [vmem:[#allocation2 + $0x60] sm:$0xff]  ;;  %v57_v22 = vld [vmem:[#allocation2 + $0x68] sm:$0xff]  ;;  %v58_v24 = vld [vmem:[#allocation2 + $0x70] sm:$0xff] }
  0x18   :  { %36 = vperm.xlu0 %239, %v29_v6   ;;  %207 = vmatprep.subr.bf16.mxu0 %v206_v8  ;;  %v226_v23 = vpack.c.bf16 %v57_v22, %v56_v21  ;;  %v59_v25 = vld [vmem:[#allocation2 + $0x78] sm:$0xff]  ;;  %v135_v32 = vld [vmem:[%s318_s2] sm:$0xff] }
  0x19   :  { %v230_v26 = vpack.c.bf16 %v59_v25, %v58_v24 }
  0x1b   :  { %209 = vmatpush3.bf16.msra.mxu0 %v206_v8 }
  0x1c   :  { %211 = vmatprep.subr.bf16.mxu0 %v210_v11 }
  0x1f   :  { %213 = vmatpush3.bf16.msra.mxu0 %v210_v11 }
  0x20   :  { %215 = vmatprep.subr.bf16.mxu0 %v214_v14 }
  0x23   :  { %217 = vmatpush3.bf16.msra.mxu0 %v214_v14 }
  0x24   :  { %219 = vmatprep.subr.bf16.mxu0 %v218_v17 }
  0x27   :  { %221 = vmatpush3.bf16.msra.mxu0 %v218_v17 }
  0x28   :  { %223 = vmatprep.subr.bf16.mxu0 %v222_v20 }
  0x2b   :  { %225 = vmatpush3.bf16.msra.mxu0 %v222_v20 }
  0x2c   :  { %227 = vmatprep.subr.bf16.mxu0 %v226_v23 }
  0x2f   :  { %229 = vmatpush3.bf16.msra.mxu0 %v226_v23 }
  0x30   :  { %231 = vmatprep.subr.bf16.mxu0 %v230_v26 }
  0x33   :  { %233 = vmatpush3.bf16.msra.mxu0 %v230_v26 }
  0x93   :  { %v34_v29 = vpop.permute.xlu0 %33 }
  0x94   :  { %vm38_vm0 = vcmp.eq.s32.totalorder %v31_v28, %v34_v29 }
  0x95   :  { %199 = vmatprep.mubr.msk.f32.mxu0 %vm38_vm0, %v268_v30 }
  0x97   :  { %v37_v31 = vpop.permute.xlu0 %36 }
  0x98   :  { %vm39_vm1 = vcmp.eq.s32.totalorder %v31_v28, %v37_v31 }
  0x99   :  { %200 = vmatmul.mubr.msk.f32.vlgmr.msra.gmra.mrb[0].mxu0 %vm39_vm1, %v268_v30 }
 0x16c   :  { %v201_v33 = vpop.f32.mrb[0].mxu0 }
 0x16d   :  { %v137_v34 = vadd.f32 %v201_v33, %v135_v32  ;;  %v126_v35 = vpop.f32.mrb[1].mxu0 }
 0x16e   :  { %v136_v36 = vadd.f32 %v135_v32, %v126_v35 }
 0x16f   :  { %139 = vst [vmem:[%s319_s3 + $0x8] sm:$0xff] %v137_v34 }
 0x170   :  { %138 = vst [vmem:[%s319_s3] sm:$0xff] %v136_v36 }
 0x171   :  { %144 = vsyncpa [#allocation3], 1 }

</bundles_post_ra>
